<compile_context>
chip_gen: v6e
topology: v6e:2x2x1
jax: 0.10.0
libtpu: 0.0.40
codegen_flags: <defaults>
</compile_context>

<pallas_src>
import functools

import jax
import jax.numpy as jnp
from jax.experimental import pallas as pl
from jax.experimental.pallas import tpu as pltpu

LANE = 128    # TPU lane width
CHUNK = 512   # lanes per inner MAC chunk (keeps live vregs ~O(30) at any tb)


def actor_linear_kernel(xT_ref, w_ref, b_ref, oT_ref, *, chunk):
    """xT_ref: (IN, tb) VMEM (batch on lanes); w_ref: (IN*OUT,) SMEM (row-major);
    b_ref: (OUT,) SMEM; oT_ref: (OUT, tb) VMEM (lane-dense)."""
    in_features = xT_ref.shape[0]
    out_features = oT_ref.shape[0]
    tb = xT_ref.shape[1]
    n_chunks = tb // chunk  # wrapper guarantees tb % chunk == 0

    def mac_rows(cols):
        # Load the IN rows of this lane chunk once and reuse for every output
        # row; store each output row immediately (lane-dense vst, no concat).
        rows = [xT_ref[k:k + 1, cols] for k in range(in_features)]
        for j in range(out_features):                      # OUT = 2, unrolled
            acc = rows[0] * w_ref[j]                       # w[0, j]
            for k in range(1, in_features):                # IN = 5, unrolled
                acc = acc + rows[k] * w_ref[k * out_features + j]
            oT_ref[j:j + 1, cols] = acc + b_ref[j]

    if n_chunks == 1:
        mac_rows(slice(None))
    else:
        @pl.loop(0, n_chunks)
        def _(c):
            mac_rows(pl.ds(pl.multiple_of(c * chunk, chunk), chunk))


def _pick_tile(batch, block_b):
    """Lane-axis tile size: multiple of LANE, multiple of CHUNK once >= CHUNK."""
    b_lanes = LANE * pl.cdiv(batch, LANE)        # lane-rounded batch
    tb = min(block_b, b_lanes)
    # Keep >= 2 grid tiles on big batches so ("parallel",) can shard the batch
    # across both v7x TensorCores; each half stays >= 4096 lanes, so the one
    # extra ~0.35us step is negligible on single-TC v5e/v6e.
    if b_lanes >= 2 * 4096 and pl.cdiv(b_lanes, tb) < 2:
        tb = pl.cdiv(b_lanes, 2)
    if tb >= CHUNK:
        tb = CHUNK * pl.cdiv(tb, CHUNK)
    else:
        tb = LANE * pl.cdiv(tb, LANE)
    return tb


def actor_net_forward_feature_major(xT, w, b, *, block_b=16384):
    """Feature-major entry point: xT: (IN, B) -> (OUT, B).

    Produce observations feature-major upstream (or fuse this layer into the
    producing op) to avoid any per-call transpose pass over HBM.
    `block_b` ~16384 saturates v5e/v6e HBM; ~32768 is ideal on v7x.
    """
    IN, B = xT.shape
    IN_w, OUT = w.shape
    assert IN == IN_w and b.shape == (OUT,), "w must be (IN, OUT) = torch weight.T"

    tb = _pick_tile(B, block_b)
    chunk = min(CHUNK, tb)
    assert tb % chunk == 0
    num_tiles = pl.cdiv(B, tb)

    kernel = functools.partial(actor_linear_kernel, chunk=chunk)

    return pl.pallas_call(
        kernel,
        out_shape=jax.ShapeDtypeStruct((OUT, B), jnp.float32),
        grid=(num_tiles,),
        in_specs=[
            pl.BlockSpec((IN, tb), lambda i: (0, i)),             # x tile (VMEM)
            pl.BlockSpec(memory_space=pltpu.MemorySpace.SMEM),    # weights, flat 1-D
            pl.BlockSpec(memory_space=pltpu.MemorySpace.SMEM),    # bias
        ],
        out_specs=pl.BlockSpec((OUT, tb), lambda i: (0, i)),
        compiler_params=pltpu.CompilerParams(
            dimension_semantics=("parallel",),  # shard batch tiles across TCs (v7x)
        ),
    )(xT, w.reshape(-1), b)


def actor_net_forward(x, w, b, *, block_b=16384):
    """x: (B, IN) f32, w: (IN, OUT) f32 (torch weight transposed), b: (OUT,) f32
    -> (B, OUT) f32.  Equivalent to PyTorch nn.Linear(IN, OUT): out = x @ w + b.
    """
    # TODO(synk): the x.T / .T below are extra XLA HBM passes for a memory-bound
    # op; call actor_net_forward_feature_major directly when activations can be
    # kept feature-major (or fuse this layer into the adjacent op).
    oT = actor_net_forward_feature_major(x.T, w, b, block_b=block_b)
    return oT.T


def init_params(key, in_features=5, out_features=2):
    # Mimic PyTorch nn.Linear default init: U(-1/sqrt(IN), 1/sqrt(IN)).
    k_w, k_b = jax.random.split(key)
    bound = 1.0 / jnp.sqrt(jnp.float32(in_features))
    # Stored as (in_features, out_features) == torch weight transposed.
    w = jax.random.uniform(
        k_w, (in_features, out_features), jnp.float32, -bound, bound
    )
    b = jax.random.uniform(k_b, (out_features,), jnp.float32, -bound, bound)
    return w, b


if __name__ == "__main__":
    key = jax.random.PRNGKey(0)
    k_x, k_x2, k_p = jax.random.split(key, 3)

    in_features, out_features = 5, 2
    w, b = init_params(k_p, in_features, out_features)

    # Small test consistent with the module (Linear(5, 2)).
    batch = 8
    x = jax.random.normal(k_x, (batch, in_features), jnp.float32)
    out = jax.block_until_ready(actor_net_forward(x, w, b))
    ref = x @ w + b[None, :]
    assert out.shape == (batch, out_features)
    assert jnp.allclose(out, ref, atol=1e-5, rtol=1e-5)

    # Second check: ragged last tile + multi-chunk inner loop path.
    batch2 = 700
    x2 = jax.random.normal(k_x2, (batch2, in_features), jnp.float32)
    out2 = jax.block_until_ready(actor_net_forward(x2, w, b))
    ref2 = x2 @ w + b[None, :]
    assert out2.shape == (batch2, out_features)
    assert jnp.allclose(out2, ref2, atol=1e-5, rtol=1e-5)

    print("KERNEL_OK")
</pallas_src>

<mosaic_0001>
module attributes {stable_mosaic.version = 11 : i64} {
  func.func @actor_linear_kernel(%arg0: i32, %arg1: memref<5x128xf32, #tpu.memory_space<vmem>>, %arg2: memref<10xf32, #tpu.memory_space<smem>>, %arg3: memref<2xf32, #tpu.memory_space<smem>>, %arg4: memref<2x128xf32, #tpu.memory_space<vmem>>) attributes {dimension_semantics = [#tpu.dimension_semantics<parallel>], iteration_bounds = array<i64: 1>, scalar_prefetch = 0 : i64, scratch_operands = 0 : i64, tpu.core_type = #tpu.core_type<tc>, window_params = [{transform_indices = @transform_0, window_bounds = array<i64: 5, 128>}, {transform_indices = @transform_1, window_bounds = array<i64: 10>}, {transform_indices = @transform_2, window_bounds = array<i64: 2>}, {transform_indices = @transform_3, window_bounds = array<i64: 2, 128>}]} {
    %c0 = arith.constant 0 : index
    %c0_0 = arith.constant 0 : index
    %0 = vector.load %arg1[%c0, %c0_0] : memref<5x128xf32, #tpu.memory_space<vmem>>, vector<1x128xf32>
    %c1 = arith.constant 1 : index
    %c0_1 = arith.constant 0 : index
    %1 = vector.load %arg1[%c1, %c0_1] : memref<5x128xf32, #tpu.memory_space<vmem>>, vector<1x128xf32>
    %c2 = arith.constant 2 : index
    %c0_2 = arith.constant 0 : index
    %2 = vector.load %arg1[%c2, %c0_2] : memref<5x128xf32, #tpu.memory_space<vmem>>, vector<1x128xf32>
    %c3 = arith.constant 3 : index
    %c0_3 = arith.constant 0 : index
    %3 = vector.load %arg1[%c3, %c0_3] : memref<5x128xf32, #tpu.memory_space<vmem>>, vector<1x128xf32>
    %c4 = arith.constant 4 : index
    %c0_4 = arith.constant 0 : index
    %4 = vector.load %arg1[%c4, %c0_4] : memref<5x128xf32, #tpu.memory_space<vmem>>, vector<1x128xf32>
    %c0_5 = arith.constant 0 : index
    %5 = memref.load %arg2[%c0_5] : memref<10xf32, #tpu.memory_space<smem>>
    %6 = vector.broadcast %5 : f32 to vector<1x128xf32>
    %7 = arith.mulf %0, %6 : vector<1x128xf32>
    %c2_6 = arith.constant 2 : index
    %8 = memref.load %arg2[%c2_6] : memref<10xf32, #tpu.memory_space<smem>>
    %9 = vector.broadcast %8 : f32 to vector<1x128xf32>
    %10 = arith.mulf %1, %9 : vector<1x128xf32>
    %11 = arith.addf %7, %10 : vector<1x128xf32>
    %c4_7 = arith.constant 4 : index
    %12 = memref.load %arg2[%c4_7] : memref<10xf32, #tpu.memory_space<smem>>
    %13 = vector.broadcast %12 : f32 to vector<1x128xf32>
    %14 = arith.mulf %2, %13 : vector<1x128xf32>
    %15 = arith.addf %11, %14 : vector<1x128xf32>
    %c6 = arith.constant 6 : index
    %16 = memref.load %arg2[%c6] : memref<10xf32, #tpu.memory_space<smem>>
    %17 = vector.broadcast %16 : f32 to vector<1x128xf32>
    %18 = arith.mulf %3, %17 : vector<1x128xf32>
    %19 = arith.addf %15, %18 : vector<1x128xf32>
    %c8 = arith.constant 8 : index
    %20 = memref.load %arg2[%c8] : memref<10xf32, #tpu.memory_space<smem>>
    %21 = vector.broadcast %20 : f32 to vector<1x128xf32>
    %22 = arith.mulf %4, %21 : vector<1x128xf32>
    %23 = arith.addf %19, %22 : vector<1x128xf32>
    %c0_8 = arith.constant 0 : index
    %24 = memref.load %arg3[%c0_8] : memref<2xf32, #tpu.memory_space<smem>>
    %25 = vector.broadcast %24 : f32 to vector<1x128xf32>
    %26 = arith.addf %23, %25 : vector<1x128xf32>
    %c0_9 = arith.constant 0 : index
    %c0_10 = arith.constant 0 : index
    %27 = vector.load %arg4[%c0_9, %c0_10] : memref<2x128xf32, #tpu.memory_space<vmem>>, vector<1x128xf32>
    tpu.vector_store %arg4[%c0_9, %c0_10], %26 {strides = array<i32>} : memref<2x128xf32, #tpu.memory_space<vmem>>, vector<1x128xf32>,
    %c1_11 = arith.constant 1 : index
    %28 = memref.load %arg2[%c1_11] : memref<10xf32, #tpu.memory_space<smem>>
    %29 = vector.broadcast %28 : f32 to vector<1x128xf32>
    %30 = arith.mulf %0, %29 : vector<1x128xf32>
    %c3_12 = arith.constant 3 : index
    %31 = memref.load %arg2[%c3_12] : memref<10xf32, #tpu.memory_space<smem>>
    %32 = vector.broadcast %31 : f32 to vector<1x128xf32>
    %33 = arith.mulf %1, %32 : vector<1x128xf32>
    %34 = arith.addf %30, %33 : vector<1x128xf32>
    %c5 = arith.constant 5 : index
    %35 = memref.load %arg2[%c5] : memref<10xf32, #tpu.memory_space<smem>>
    %36 = vector.broadcast %35 : f32 to vector<1x128xf32>
    %37 = arith.mulf %2, %36 : vector<1x128xf32>
    %38 = arith.addf %34, %37 : vector<1x128xf32>
    %c7 = arith.constant 7 : index
    %39 = memref.load %arg2[%c7] : memref<10xf32, #tpu.memory_space<smem>>
    %40 = vector.broadcast %39 : f32 to vector<1x128xf32>
    %41 = arith.mulf %3, %40 : vector<1x128xf32>
    %42 = arith.addf %38, %41 : vector<1x128xf32>
    %c9 = arith.constant 9 : index
    %43 = memref.load %arg2[%c9] : memref<10xf32, #tpu.memory_space<smem>>
    %44 = vector.broadcast %43 : f32 to vector<1x128xf32>
    %45 = arith.mulf %4, %44 : vector<1x128xf32>
    %46 = arith.addf %42, %45 : vector<1x128xf32>
    %c1_13 = arith.constant 1 : index
    %47 = memref.load %arg3[%c1_13] : memref<2xf32, #tpu.memory_space<smem>>
    %48 = vector.broadcast %47 : f32 to vector<1x128xf32>
    %49 = arith.addf %46, %48 : vector<1x128xf32>
    %c1_14 = arith.constant 1 : index
    %c0_15 = arith.constant 0 : index
    %50 = vector.load %arg4[%c1_14, %c0_15] : memref<2x128xf32, #tpu.memory_space<vmem>>, vector<1x128xf32>
    tpu.vector_store %arg4[%c1_14, %c0_15], %49 {strides = array<i32>} : memref<2x128xf32, #tpu.memory_space<vmem>>, vector<1x128xf32>,
    return
  }
  func.func @transform_0(%arg0: i32) -> (i32, i32) {
    %c0_i32 = arith.constant 0 : i32
    %c0_i32_0 = arith.constant 0 : i32
    return %c0_i32, %arg0 : i32, i32
  }
  func.func @transform_1(%arg0: i32) -> i32 {
    %c0_i32 = arith.constant 0 : i32
    %c0_i32_0 = arith.constant 0 : i32
    return %c0_i32 : i32
  }
  func.func @transform_2(%arg0: i32) -> i32 {
    %c0_i32 = arith.constant 0 : i32
    %c0_i32_0 = arith.constant 0 : i32
    return %c0_i32 : i32
  }
  func.func @transform_3(%arg0: i32) -> (i32, i32) {
    %c0_i32 = arith.constant 0 : i32
    %c0_i32_0 = arith.constant 0 : i32
    return %c0_i32, %arg0 : i32, i32
  }
}

</mosaic_0001>

<bundles_post_ra>
// kernel: tpu_custom_call.1
= control target key start
LH: loop header
LB: loop body
LE: loop exit
PB: predicated region body
PF: predicated region fallthrough
CT: control target
= control target key end

     0   :  { %8 = vsyncpa [#allocation3], 0  ;;  %s245_s0 = inlined_call_operand.hbm [shape: f32[5,8], index: 0, kind: input, shape index: {}]   ;;  %s246_s1 = inlined_call_operand.vmem [shape: f32[10], index: 1, kind: input, shape index: {}]   ;;  %s247_s2 = inlined_call_operand.vmem [shape: f32[2], index: 2, kind: input, shape index: {}]   ;;  %s248_s3 = inlined_call_operand.hbm [shape: f32[2,8], index: 3, kind: output, shape index: {}]  }
   0x1   :  { %9 = vsyncpa [#allocation5], 0 }
   0x2   :  { %10 = vsyncpa [#allocation8], 0 }
   0x3   :  { %11 = vsyncpa [#allocation4], 0  ;;  %s28_s14 = sshll.u32 %s246_s1, 4  ;;  %s206_s15 = smov [#allocation2]   ;;  %s29_s14 = int_to_ptr.vmem [resolvable:$true] %s28_s14 }
   0x4   :  { %s18_s16 = sshll.u32 %s206_s15, 4  ;;  %s19_s16 = int_to_ptr.vmem [resolvable:$true] %s18_s16 }
   0x5   :  { %s142_s17 = scalar_lea.vmem %s19_s16, 128  ;;  %p147_p1 = scmp.lt.s32.totalorder %s19_s16, %s19_s16 }
   0x6   :  { %p143_p0 = scmp.ne.s32.totalorder %s19_s16, %s142_s17  ;;  %p148_p2 = scmp.lt.s32.totalorder %s142_s17, %s142_s17 }
   0x8   :  { %p149_p3 = por %p148_p2, %p147_p1 }
   0xa   :  { %p150_p4 = pnand %p149_p3, %p143_p0 }
   0xc   :  { %153 = shalt.err (!%p150_p4)
}
   0xd   :  { %21 = dma.hbm_to_vmem [thread:$0]  %s245_s0, 128, %s19_s16, [#allocation3]  }
   0xe   :  { %s154_s20 = scalar_lea.vmem %s29_s14, 16  ;;  %p159_p6 = scmp.lt.s32.totalorder %s29_s14, %s29_s14 }
   0xf   :  { %p155_p5 = scmp.ne.s32.totalorder %s29_s14, %s154_s20  ;;  %p160_p7 = scmp.lt.s32.totalorder %s154_s20, %s154_s20 }
  0x11   :  { %p161_p8 = por %p160_p7, %p159_p6 }
  0x13   :  { %p162_p9 = pnand %p161_p8, %p155_p5 }
  0x15   :  { %165 = shalt.err (!%p162_p9)
}
  0x16   :  { %s207_s1 = smov [#allocation6]   ;;  %s38_s23 = sshll.u32 %s247_s2, 4  ;;  %s39_s23 = int_to_ptr.vmem [resolvable:$true] %s38_s23 }
  0x17   :  { %31 = dma.vmem_to_smem %s29_s14, 16, %s207_s1, [#allocation5]  }
  0x18   :  { %s166_s24 = scalar_lea.vmem %s39_s23, 16  ;;  %p171_p11 = scmp.lt.s32.totalorder %s39_s23, %s39_s23 }
  0x19   :  { %p167_p10 = scmp.ne.s32.totalorder %s39_s23, %s166_s24  ;;  %p172_p12 = scmp.lt.s32.totalorder %s166_s24, %s166_s24 }
  0x1b   :  { %p173_p13 = por %p172_p12, %p171_p11 }
  0x1d   :  { %p174_p0 = pnand %p173_p13, %p167_p10 }
  0x1f   :  { %177 = shalt.err (!%p174_p0)
}
  0x20   :  { %s208_s0 = smov [#allocation7]  }
  0x21   :  { %41 = dma.vmem_to_smem %s39_s23, 16, %s208_s0, [#allocation8]  }
  0x22   :  { %198 = dma.done.wait [#allocation3], 128  }
  0x23   :  { %199 = vsyncadd [#allocation3], 4294967168 }
  0x24   :  { %200 = dma.done.wait [#allocation5], 16  }
  0x25   :  { %201 = vsyncadd [#allocation5], 4294967280 }
  0x26   :  { %202 = dma.done.wait [#allocation8], 16  }
  0x27   :  { %203 = vsyncadd [#allocation8], 4294967280 }
  0x28   :  { %51 = sfence }
  0x29   :  { %s57_s25 = sld [smem:[#allocation6]]  ;;  %v52_v0 = vld [vmem:[#allocation2] sm:$0x1]  ;;  %v53_v1 = vld [vmem:[#allocation2 + $0x1] sm:$0x1]  ;;  %s209_s9 = smov [#allocation9]  }
  0x2a   :  { %s120_s26 = sld [smem:[#allocation6 + $0x2]]  ;;  %v54_v2 = vld [vmem:[#allocation2 + $0x2] sm:$0x1]  ;;  %v55_v4 = vld [vmem:[#allocation2 + $0x3] sm:$0x1]  ;;  %s109_s10 = sshll.u32 %s209_s9, 4  ;;  %s110_s10 = int_to_ptr.vmem [resolvable:$true] %s109_s10 }
  0x2b   :  { %s121_s2 = sld [smem:[#allocation6 + $0x4]]  ;;  %v56_v9 = vld [vmem:[#allocation2 + $0x4] sm:$0x1]  ;;  %s178_s11 = scalar_lea.vmem %s110_s10, 32 }
  0x2c   :  { %s122_s27 = sld [smem:[#allocation6 + $0x6]]  ;;  %p179_p1 = scmp.ne.s32.totalorder %s110_s10, %s178_s11 }
  0x2d   :  { %s123_s28 = sld [smem:[#allocation6 + $0x8]]  ;;  %p183_p2 = scmp.lt.s32.totalorder %s110_s10, %s110_s10 }
  0x2e   :  { %s239_s29 = sld [smem:[#allocation7]]  ;;  %p184_p3 = scmp.lt.s32.totalorder %s178_s11, %s178_s11 }
  0x2f   :  { %v58_v3 = vstv %s57_s25  ;;  %s124_s30 = sld [smem:[#allocation6 + $0x1]] }
  0x30   :  { %v59_v5 = vmul.f32 %v58_v3, %v52_v0  ;;  %v61_v6 = vstv %s120_s26  ;;  %s125_s4 = sld [smem:[#allocation6 + $0x3]]  ;;  %p185_p4 = por %p184_p3, %p183_p2 }
  0x31   :  { %v62_v7 = vmul.f32 %v61_v6, %v53_v1  ;;  %v65_v8 = vstv %s121_s2  ;;  %s126_s5 = sld [smem:[#allocation6 + $0x5]] }
  0x32   :  { %v66_v10 = vmul.f32 %v65_v8, %v54_v2  ;;  %v69_v11 = vstv %s122_s27  ;;  %s127_s6 = sld [smem:[#allocation6 + $0x7]]  ;;  %p186_p5 = pnand %p185_p4, %p179_p1 }
  0x33   :  { %v63_v12 = vadd.f32 %v62_v7, %v59_v5  ;;  %v70_v13 = vmul.f32 %v69_v11, %v55_v4  ;;  %v73_v14 = vstv %s123_s28  ;;  %s128_s7 = sld [smem:[#allocation6 + $0x9]] }
  0x34   :  { %v74_v16 = vmul.f32 %v73_v14, %v56_v9  ;;  %s129_s8 = sld [smem:[#allocation7 + $0x1]]  ;;  %v77_v23 = vstv %s239_s29 }
  0x35   :  { %v67_v15 = vadd.f32 %v66_v10, %v63_v12  ;;  %v81_v17 = vstv %s124_s30 }
  0x36   :  { %v82_v18 = vmul.f32 %v81_v17, %v52_v0  ;;  %v84_v19 = vstv %s125_s4 }
  0x37   :  { %v71_v20 = vadd.f32 %v70_v13, %v67_v15  ;;  %v85_v21 = vmul.f32 %v84_v19, %v53_v1  ;;  %v88_v22 = vstv %s126_s5 }
  0x38   :  { %v89_v24 = vmul.f32 %v88_v22, %v54_v2  ;;  %v92_v25 = vstv %s127_s6 }
  0x39   :  { %v75_v26 = vadd.f32 %v74_v16, %v71_v20  ;;  %v86_v27 = vadd.f32 %v85_v21, %v82_v18  ;;  %v93_v28 = vmul.f32 %v92_v25, %v55_v4  ;;  %v96_v29 = vstv %s128_s7 }
  0x3a   :  { %v97_v32 = vmul.f32 %v96_v29, %v56_v9  ;;  %v100_v34 = vstv %s129_s8 }
  0x3b   :  { %v78_v30 = vadd.f32 %v77_v23, %v75_v26  ;;  %v90_v31 = vadd.f32 %v89_v24, %v86_v27 }
  0x3d   :  { %79 = vst [vmem:[#allocation9] sm:$0x1] %v78_v30  ;;  %v94_v33 = vadd.f32 %v93_v28, %v90_v31 }
  0x3f   :  { %v98_v35 = vadd.f32 %v97_v32, %v94_v33 }
  0x41   :  { %v101_v36 = vadd.f32 %v100_v34, %v98_v35 }
  0x43   :  { %102 = vst [vmem:[#allocation9 + $0x1] sm:$0x1] %v101_v36 }
  0x44   :  { %189 = shalt.err (!%p186_p5)
}
  0x45   :  { %112 = dma.vmem_to_hbm [thread:$0]  %s110_s10, 32, %s248_s3, [#allocation4]  }
  0x46   :  { %204 = dma.done.wait [#allocation4], 32  }
  0x47   :  { %205 = vsyncadd [#allocation4], 4294967264 }
  0x48   :  { %116 = vsyncpa [#allocation3], 1 }
  0x49   :  { %117 = vsyncpa [#allocation4], 1 }
  0x4a   :  { %118 = vsyncpa [#allocation5], 1 }
  0x4b   :  { %119 = vsyncpa [#allocation8], 1 }

</bundles_post_ra>
